<compile_context>
chip_gen: v7x
topology: tpu7x:2x2x1
jax: 0.10.0
libtpu: 0.0.40
codegen_flags: <defaults>
</compile_context>

<pallas_src>
import math

import numpy as np
import jax
import jax.numpy as jnp
from jax.experimental import pallas as pl
from jax.experimental.pallas import tpu as pltpu


def _round_up(x, m):
    return ((x + m - 1) // m) * m


# ----------------------------------------------------------------------------
# Kernel
# ----------------------------------------------------------------------------
def _make_mask_kernel(n_tgt, apply_complement):
    """Builds all (n_tgt + 1) rectangular block masks for a batch block.

    coords_ref: (2, HW_pad) int32  -- row / col id per flattened patch (pad
                lanes carry row == H, col == W so they never hit any rect).
    tgt_ref:    (bb, 4*n_tgt) int32 -- [top, bottom, left, right] per target.
    ctx_ref:    (bb, 4) int32       -- [top, bottom, left, right] context rect.
    out_ref:    (n_tgt + 1, bb, HW_pad) int8 -- targets 0..n_tgt-1, context last.
    """

    def kernel(coords_ref, tgt_ref, ctx_ref, out_ref):
        rows = coords_ref[0:1, :]          # (1, HW_pad) -- splat via compare bcast
        cols = coords_ref[1:2, :]          # (1, HW_pad)

        tr = tgt_ref[...]                  # (bb, 4*n_tgt)
        union = None
        for t in range(n_tgt):             # static unroll (n_tgt == 4)
            top = tr[:, 4 * t + 0: 4 * t + 1]       # (bb, 1)
            bot = tr[:, 4 * t + 1: 4 * t + 2]
            lft = tr[:, 4 * t + 2: 4 * t + 3]
            rgt = tr[:, 4 * t + 3: 4 * t + 4]
            m = ((rows >= top) & (rows < bot) &
                 (cols >= lft) & (cols < rgt))       # (bb, HW_pad) bool
            out_ref[t] = m.astype(jnp.int8)
            if apply_complement:
                union = m if union is None else jnp.logical_or(union, m)

        cr = ctx_ref[...]                  # (bb, 4)
        cm = ((rows >= cr[:, 0:1]) & (rows < cr[:, 1:2]) &
              (cols >= cr[:, 2:3]) & (cols < cr[:, 3:4]))
        if apply_complement:               # ctx & ~union(targets)
            cm = jnp.logical_and(cm, jnp.logical_not(union))
        out_ref[n_tgt] = cm.astype(jnp.int8)

    return kernel


# ----------------------------------------------------------------------------
# Memoized callables / constants
# ----------------------------------------------------------------------------
_COORDS_CACHE = {}          # (H, W) -> (device coords (2, HW_pad) int32, HW_pad)
_CALL_CACHE = {}            # (n_tgt, complement, b_pad, HW_pad) -> pallas callable

_BATCH_BLOCK = 512          # grid block over batch when b_eff is large (mult of 32)
_SUBLANE_PAD = 32           # int8 native sublane tile


def _get_coords(H, W):
    key = (H, W)
    hit = _COORDS_CACHE.get(key)
    if hit is not None:
        return hit
    HW = H * W
    HW_pad = max(128, _round_up(HW, 128))            # lane-dense last dim
    idx = np.arange(HW_pad, dtype=np.int32)
    rows = np.where(idx < HW, idx // W, H).astype(np.int32)   # pad lane -> H
    cols = np.where(idx < HW, idx % W, W).astype(np.int32)    # pad lane -> W
    coords = jnp.asarray(np.stack([rows, cols], axis=0))      # one-time upload
    _COORDS_CACHE[key] = (coords, HW_pad)
    return _COORDS_CACHE[key]


def _get_mask_callable(n_tgt, apply_complement, b_pad, HW_pad):
    key = (n_tgt, apply_complement, b_pad, HW_pad)
    fn = _CALL_CACHE.get(key)
    if fn is not None:
        return fn

    kernel = _make_mask_kernel(n_tgt, apply_complement)
    out_shape = jax.ShapeDtypeStruct((n_tgt + 1, b_pad, HW_pad), jnp.int8)

    if b_pad <= _BATCH_BLOCK:
        # Tiny problem: single ungridded call, everything resident in VMEM.
        vmem = pl.BlockSpec(memory_space=pltpu.MemorySpace.VMEM)
        fn = pl.pallas_call(
            kernel,
            out_shape=out_shape,
            in_specs=[vmem, vmem, vmem],
            out_specs=vmem,
        )
    else:
        # Large batch: 1-D parallel grid over the batch axis bounds VMEM
        # (v7x: 64 MiB) and lets both TensorCores split the work.
        nb = b_pad // _BATCH_BLOCK
        fn = pl.pallas_call(
            kernel,
            out_shape=out_shape,
            grid_spec=pltpu.PrefetchScalarGridSpec(
                num_scalar_prefetch=0,
                grid=(nb,),
                in_specs=[
                    pl.BlockSpec((2, HW_pad), lambda i: (0, 0)),
                    pl.BlockSpec((_BATCH_BLOCK, 4 * n_tgt), lambda i: (i, 0)),
                    pl.BlockSpec((_BATCH_BLOCK, 4), lambda i: (i, 0)),
                ],
                out_specs=pl.BlockSpec((n_tgt + 1, _BATCH_BLOCK, HW_pad),
                                       lambda i: (0, i, 0)),
            ),
            compiler_params=pltpu.CompilerParams(
                dimension_semantics=("parallel",)),
        )

    _CALL_CACHE[key] = fn
    return fn


def _build_masks_pallas(tgt_rects, ctx_rects, b_eff, n_tgt, H, W, allow_overlap):
    """tgt_rects: (b_eff, n_tgt, 4) int32 [top, bottom, left, right];
    ctx_rects: (b_eff, 4) int32 same layout.

    Returns masks (n_tgt + 1, b_pad, HW_pad) int8; rows 0..n_tgt-1 are the
    target masks, row n_tgt is the context mask. Caller slices [:, :b_eff, :HW].
    """
    coords, HW_pad = _get_coords(H, W)

    # Pad batch to the int8 sublane tile (dense stores); big batches pad to the
    # grid block instead. Padded rows have all-zero rects -> all-zero masks.
    b_pad = _round_up(b_eff, _SUBLANE_PAD)
    if b_pad > _BATCH_BLOCK:
        b_pad = _round_up(b_eff, _BATCH_BLOCK)
    if b_pad != b_eff:
        pad = b_pad - b_eff
        tgt_rects = np.concatenate(
            [tgt_rects, np.zeros((pad, n_tgt, 4), np.int32)], axis=0)
        ctx_rects = np.concatenate(
            [ctx_rects, np.zeros((pad, 4), np.int32)], axis=0)

    fn = _get_mask_callable(n_tgt, not allow_overlap, b_pad, HW_pad)
    masks = fn(coords,
               jnp.asarray(tgt_rects.reshape(b_pad, n_tgt * 4), jnp.int32),
               jnp.asarray(ctx_rects.reshape(b_pad, 4), jnp.int32))
    return masks, HW_pad


# ----------------------------------------------------------------------------
# Module mirror
# ----------------------------------------------------------------------------
class MultiblockMaskingPallas:
    """Mirror of Multiblock_masking; mask construction runs in a Pallas kernel."""

    def __init__(self, img_size=(224, 224), patch_size=16,
                 ctx_scale=(0.85, 1.0), tgt_scale=(0.15, 0.2),
                 tgt_aspect_ratio=(0.75, 1.5), allow_overlap=False,
                 shared_masks=False):
        self.patch_size = patch_size
        self.height = img_size[0] // patch_size
        self.width = img_size[1] // patch_size
        self.ctx_scale = ctx_scale
        self.tgt_scale = tgt_scale
        self.tgt_aspect_ratio = tgt_aspect_ratio
        self.allow_overlap = allow_overlap
        self.n_tgt = 4
        self.min_keep = 4
        self.shared_masks = shared_masks
        self._itr_counter = -1                 # host-side counter (no mp.Value)

    def step(self):
        self._itr_counter += 1
        return self._itr_counter

    def _sample_block_size(self, gen, scale, aspect_ratio_scale):
        _rand = float(gen.random_sample())
        min_s, max_s = scale
        mask_scale = min_s + _rand * (max_s - min_s)
        n_patches = int(self.height * self.width * mask_scale)
        min_ar, max_ar = aspect_ratio_scale
        aspect_ratio = min_ar + _rand * (max_ar - min_ar)
        h = int(round(math.sqrt(n_patches * aspect_ratio)))
        w = int(round(math.sqrt(n_patches / aspect_ratio)))
        # original torch code checks h against self.width; fixed per review to
        # be correct for non-square patch grids
        assert h <= self.height and w <= self.width, \
            'Block height and width should be less than image size'
        return h, w

    def _sample_rect(self, rng, h, w):
        top = 0 if h == self.height else int(rng.randint(0, self.height - h + 1))
        left = 0 if w == self.width else int(rng.randint(0, self.width - w + 1))
        assert h * w >= self.min_keep
        # [top, bottom, left, right] -- bottom/right precomputed for the kernel
        return top, top + h, left, left + w

    def forward(self, batch):
        B = len(batch)
        collated_batch = jnp.stack([item[0] for item in batch], axis=0)

        seed = self.step()
        gen = np.random.RandomState(seed)          # stand-in for torch.Generator
        pos_rng = np.random.RandomState(seed + 1)  # stand-in for torch global RNG

        tgt_size = self._sample_block_size(gen, self.tgt_scale, self.tgt_aspect_ratio)
        ctx_size = self._sample_block_size(gen, self.ctx_scale, (1.0, 1.0))

        if self.shared_masks:
            b_eff = 1
        else:
            # PyTorch code re-samples sizes in the non-shared branch
            tgt_size = self._sample_block_size(gen, self.tgt_scale, self.tgt_aspect_ratio)
            ctx_size = self._sample_block_size(gen, self.ctx_scale, (1.0, 1.0))
            b_eff = B

        th, tw = tgt_size
        ch, cw = ctx_size
        tgt_rects = np.zeros((b_eff, self.n_tgt, 4), dtype=np.int32)
        ctx_rects = np.zeros((b_eff, 4), dtype=np.int32)
        for b in range(b_eff):
            for t in range(self.n_tgt):
                tgt_rects[b, t] = self._sample_rect(pos_rng, th, tw)
            ctx_rects[b] = self._sample_rect(pos_rng, ch, cw)

        masks, _ = _build_masks_pallas(
            tgt_rects, ctx_rects, b_eff, self.n_tgt, self.height, self.width,
            self.allow_overlap)

        HW = self.height * self.width
        # Trim pad lanes / pad batch rows on device, then one small int8 D2H copy.
        masks_np = np.asarray(masks[:, :b_eff, :HW])
        tgt_flat = masks_np[:self.n_tgt]                   # (n_tgt, b_eff, HW)
        ctx_flat = masks_np[self.n_tgt]                    # (b_eff, HW)

        # counts computed host-side from the masks we already transferred
        min_keep_tgt = int(tgt_flat.sum(axis=-1).min())
        min_keep_ctx = int(ctx_flat.sum(axis=-1).min())
        # TODO(synk): like the PyTorch collator, there is no retry if the target
        # union fully covers the context rect; min_keep_ctx may drop below
        # min_keep (matches reference behavior).

        # nonzero -> truncate-to-min-length (dynamic-shape glue, like torch code)
        # TODO(synk): torch.nonzero yields int64 indices; int32 kept here
        # (JAX default x64-disabled) -- flip if downstream needs int64 gathers.
        tgt_idx = np.zeros((self.n_tgt, B, min_keep_tgt), dtype=np.int32)
        ctx_idx = np.zeros((1, B, min_keep_ctx), dtype=np.int32)
        for b in range(B):
            be = 0 if self.shared_masks else b
            for t in range(self.n_tgt):
                tgt_idx[t, b] = np.nonzero(tgt_flat[t, be])[0][:min_keep_tgt]
            ctx_idx[0, b] = np.nonzero(ctx_flat[be])[0][:min_keep_ctx]

        collated_masks_ctx = jnp.asarray(ctx_idx)
        collated_masks_tgt = jnp.asarray(tgt_idx)
        return collated_batch, collated_masks_ctx, collated_masks_tgt


if __name__ == "__main__":
    key = jax.random.PRNGKey(0)
    B, C, IMG = 2, 3, 32          # 32x32 image, patch 4 -> 8x8 = 64 patches
    imgs = jax.random.normal(key, (B, C, IMG, IMG), dtype=jnp.float32)
    batch = [(imgs[i], jnp.int32(i)) for i in range(B)]   # (image, label) pairs

    masker = MultiblockMaskingPallas(img_size=(IMG, IMG), patch_size=4)
    collated, masks_ctx, masks_tgt = masker.forward(batch)

    jax.block_until_ready(collated)
    jax.block_until_ready(masks_ctx)
    jax.block_until_ready(masks_tgt)

    assert collated.shape == (B, C, IMG, IMG)
    assert masks_tgt.shape[0] == 4 and masks_tgt.shape[1] == B
    assert masks_ctx.shape[0] == 1 and masks_ctx.shape[1] == B

    # second call exercises the memoized pallas_call (no re-trace / re-lower)
    collated2, masks_ctx2, masks_tgt2 = masker.forward(batch)
    jax.block_until_ready(masks_tgt2)

    print("KERNEL_OK")
</pallas_src>

<mosaic_0001>
module attributes {stable_mosaic.version = 11 : i64} {
  func.func @kernel(%arg0: memref<2x128xi32, #tpu.memory_space<vmem>>, %arg1: memref<32x16xi32, #tpu.memory_space<vmem>>, %arg2: memref<32x4xi32, #tpu.memory_space<vmem>>, %arg3: memref<5x32x128xi8, #tpu.memory_space<vmem>>) attributes {dimension_semantics = [], scalar_prefetch = 0 : i64, scratch_operands = 0 : i64, tpu.core_type = #tpu.core_type<tc>} {
    %c0 = arith.constant 0 : index
    %c0_0 = arith.constant 0 : index
    %0 = vector.load %arg0[%c0, %c0_0] : memref<2x128xi32, #tpu.memory_space<vmem>>, vector<1x128xi32>
    %c1 = arith.constant 1 : index
    %c0_1 = arith.constant 0 : index
    %1 = vector.load %arg0[%c1, %c0_1] : memref<2x128xi32, #tpu.memory_space<vmem>>, vector<1x128xi32>
    %c0_2 = arith.constant 0 : index
    %c0_3 = arith.constant 0 : index
    %2 = vector.load %arg1[%c0_2, %c0_3] : memref<32x16xi32, #tpu.memory_space<vmem>>, vector<32x16xi32>
    %3 = vector.extract_strided_slice %2 {offsets = [0, 0], sizes = [32, 1], strides = [1, 1]} : vector<32x16xi32> to vector<32x1xi32>
    %4 = vector.extract_strided_slice %2 {offsets = [0, 1], sizes = [32, 1], strides = [1, 1]} : vector<32x16xi32> to vector<32x1xi32>
    %5 = vector.extract_strided_slice %2 {offsets = [0, 2], sizes = [32, 1], strides = [1, 1]} : vector<32x16xi32> to vector<32x1xi32>
    %6 = vector.extract_strided_slice %2 {offsets = [0, 3], sizes = [32, 1], strides = [1, 1]} : vector<32x16xi32> to vector<32x1xi32>
    %7 = vector.broadcast %0 : vector<1x128xi32> to vector<32x128xi32>
    %8 = vector.broadcast %3 : vector<32x1xi32> to vector<32x128xi32>
    %9 = arith.cmpi sge, %7, %8 : vector<32x128xi32>
    %10 = vector.broadcast %0 : vector<1x128xi32> to vector<32x128xi32>
    %11 = vector.broadcast %4 : vector<32x1xi32> to vector<32x128xi32>
    %12 = arith.cmpi slt, %10, %11 : vector<32x128xi32>
    %13 = arith.andi %9, %12 : vector<32x128xi1>
    %14 = vector.broadcast %1 : vector<1x128xi32> to vector<32x128xi32>
    %15 = vector.broadcast %5 : vector<32x1xi32> to vector<32x128xi32>
    %16 = arith.cmpi sge, %14, %15 : vector<32x128xi32>
    %17 = arith.andi %13, %16 : vector<32x128xi1>
    %18 = vector.broadcast %1 : vector<1x128xi32> to vector<32x128xi32>
    %19 = vector.broadcast %6 : vector<32x1xi32> to vector<32x128xi32>
    %20 = arith.cmpi slt, %18, %19 : vector<32x128xi32>
    %21 = arith.andi %17, %20 : vector<32x128xi1>
    %22 = arith.extui %21 : vector<32x128xi1> to vector<32x128xi8>
    %c0_4 = arith.constant 0 : index
    %c0_5 = arith.constant 0 : index
    %c0_6 = arith.constant 0 : index
    %23 = vector.load %arg3[%c0_4, %c0_5, %c0_6] : memref<5x32x128xi8, #tpu.memory_space<vmem>>, vector<1x32x128xi8>
    %24 = vector.shape_cast %23 : vector<1x32x128xi8> to vector<32x128xi8>
    %25 = vector.shape_cast %22 : vector<32x128xi8> to vector<1x32x128xi8>
    tpu.vector_store %arg3[%c0_4, %c0_5, %c0_6], %25 {strides = array<i32>} : memref<5x32x128xi8, #tpu.memory_space<vmem>>, vector<1x32x128xi8>,
    %26 = vector.extract_strided_slice %2 {offsets = [0, 4], sizes = [32, 1], strides = [1, 1]} : vector<32x16xi32> to vector<32x1xi32>
    %27 = vector.extract_strided_slice %2 {offsets = [0, 5], sizes = [32, 1], strides = [1, 1]} : vector<32x16xi32> to vector<32x1xi32>
    %28 = vector.extract_strided_slice %2 {offsets = [0, 6], sizes = [32, 1], strides = [1, 1]} : vector<32x16xi32> to vector<32x1xi32>
    %29 = vector.extract_strided_slice %2 {offsets = [0, 7], sizes = [32, 1], strides = [1, 1]} : vector<32x16xi32> to vector<32x1xi32>
    %30 = vector.broadcast %0 : vector<1x128xi32> to vector<32x128xi32>
    %31 = vector.broadcast %26 : vector<32x1xi32> to vector<32x128xi32>
    %32 = arith.cmpi sge, %30, %31 : vector<32x128xi32>
    %33 = vector.broadcast %0 : vector<1x128xi32> to vector<32x128xi32>
    %34 = vector.broadcast %27 : vector<32x1xi32> to vector<32x128xi32>
    %35 = arith.cmpi slt, %33, %34 : vector<32x128xi32>
    %36 = arith.andi %32, %35 : vector<32x128xi1>
    %37 = vector.broadcast %1 : vector<1x128xi32> to vector<32x128xi32>
    %38 = vector.broadcast %28 : vector<32x1xi32> to vector<32x128xi32>
    %39 = arith.cmpi sge, %37, %38 : vector<32x128xi32>
    %40 = arith.andi %36, %39 : vector<32x128xi1>
    %41 = vector.broadcast %1 : vector<1x128xi32> to vector<32x128xi32>
    %42 = vector.broadcast %29 : vector<32x1xi32> to vector<32x128xi32>
    %43 = arith.cmpi slt, %41, %42 : vector<32x128xi32>
    %44 = arith.andi %40, %43 : vector<32x128xi1>
    %45 = arith.extui %44 : vector<32x128xi1> to vector<32x128xi8>
    %c1_7 = arith.constant 1 : index
    %c0_8 = arith.constant 0 : index
    %c0_9 = arith.constant 0 : index
    %46 = vector.load %arg3[%c1_7, %c0_8, %c0_9] : memref<5x32x128xi8, #tpu.memory_space<vmem>>, vector<1x32x128xi8>
    %47 = vector.shape_cast %46 : vector<1x32x128xi8> to vector<32x128xi8>
    %48 = vector.shape_cast %45 : vector<32x128xi8> to vector<1x32x128xi8>
    tpu.vector_store %arg3[%c1_7, %c0_8, %c0_9], %48 {strides = array<i32>} : memref<5x32x128xi8, #tpu.memory_space<vmem>>, vector<1x32x128xi8>,
    %49 = arith.ori %21, %44 : vector<32x128xi1>
    %50 = vector.extract_strided_slice %2 {offsets = [0, 8], sizes = [32, 1], strides = [1, 1]} : vector<32x16xi32> to vector<32x1xi32>
    %51 = vector.extract_strided_slice %2 {offsets = [0, 9], sizes = [32, 1], strides = [1, 1]} : vector<32x16xi32> to vector<32x1xi32>
    %52 = vector.extract_strided_slice %2 {offsets = [0, 10], sizes = [32, 1], strides = [1, 1]} : vector<32x16xi32> to vector<32x1xi32>
    %53 = vector.extract_strided_slice %2 {offsets = [0, 11], sizes = [32, 1], strides = [1, 1]} : vector<32x16xi32> to vector<32x1xi32>
    %54 = vector.broadcast %0 : vector<1x128xi32> to vector<32x128xi32>
    %55 = vector.broadcast %50 : vector<32x1xi32> to vector<32x128xi32>
    %56 = arith.cmpi sge, %54, %55 : vector<32x128xi32>
    %57 = vector.broadcast %0 : vector<1x128xi32> to vector<32x128xi32>
    %58 = vector.broadcast %51 : vector<32x1xi32> to vector<32x128xi32>
    %59 = arith.cmpi slt, %57, %58 : vector<32x128xi32>
    %60 = arith.andi %56, %59 : vector<32x128xi1>
    %61 = vector.broadcast %1 : vector<1x128xi32> to vector<32x128xi32>
    %62 = vector.broadcast %52 : vector<32x1xi32> to vector<32x128xi32>
    %63 = arith.cmpi sge, %61, %62 : vector<32x128xi32>
    %64 = arith.andi %60, %63 : vector<32x128xi1>
    %65 = vector.broadcast %1 : vector<1x128xi32> to vector<32x128xi32>
    %66 = vector.broadcast %53 : vector<32x1xi32> to vector<32x128xi32>
    %67 = arith.cmpi slt, %65, %66 : vector<32x128xi32>
    %68 = arith.andi %64, %67 : vector<32x128xi1>
    %69 = arith.extui %68 : vector<32x128xi1> to vector<32x128xi8>
    %c2 = arith.constant 2 : index
    %c0_10 = arith.constant 0 : index
    %c0_11 = arith.constant 0 : index
    %70 = vector.load %arg3[%c2, %c0_10, %c0_11] : memref<5x32x128xi8, #tpu.memory_space<vmem>>, vector<1x32x128xi8>
    %71 = vector.shape_cast %70 : vector<1x32x128xi8> to vector<32x128xi8>
    %72 = vector.shape_cast %69 : vector<32x128xi8> to vector<1x32x128xi8>
    tpu.vector_store %arg3[%c2, %c0_10, %c0_11], %72 {strides = array<i32>} : memref<5x32x128xi8, #tpu.memory_space<vmem>>, vector<1x32x128xi8>,
    %73 = arith.ori %49, %68 : vector<32x128xi1>
    %74 = vector.extract_strided_slice %2 {offsets = [0, 12], sizes = [32, 1], strides = [1, 1]} : vector<32x16xi32> to vector<32x1xi32>
    %75 = vector.extract_strided_slice %2 {offsets = [0, 13], sizes = [32, 1], strides = [1, 1]} : vector<32x16xi32> to vector<32x1xi32>
    %76 = vector.extract_strided_slice %2 {offsets = [0, 14], sizes = [32, 1], strides = [1, 1]} : vector<32x16xi32> to vector<32x1xi32>
    %77 = vector.extract_strided_slice %2 {offsets = [0, 15], sizes = [32, 1], strides = [1, 1]} : vector<32x16xi32> to vector<32x1xi32>
    %78 = vector.broadcast %0 : vector<1x128xi32> to vector<32x128xi32>
    %79 = vector.broadcast %74 : vector<32x1xi32> to vector<32x128xi32>
    %80 = arith.cmpi sge, %78, %79 : vector<32x128xi32>
    %81 = vector.broadcast %0 : vector<1x128xi32> to vector<32x128xi32>
    %82 = vector.broadcast %75 : vector<32x1xi32> to vector<32x128xi32>
    %83 = arith.cmpi slt, %81, %82 : vector<32x128xi32>
    %84 = arith.andi %80, %83 : vector<32x128xi1>
    %85 = vector.broadcast %1 : vector<1x128xi32> to vector<32x128xi32>
    %86 = vector.broadcast %76 : vector<32x1xi32> to vector<32x128xi32>
    %87 = arith.cmpi sge, %85, %86 : vector<32x128xi32>
    %88 = arith.andi %84, %87 : vector<32x128xi1>
    %89 = vector.broadcast %1 : vector<1x128xi32> to vector<32x128xi32>
    %90 = vector.broadcast %77 : vector<32x1xi32> to vector<32x128xi32>
    %91 = arith.cmpi slt, %89, %90 : vector<32x128xi32>
    %92 = arith.andi %88, %91 : vector<32x128xi1>
    %93 = arith.extui %92 : vector<32x128xi1> to vector<32x128xi8>
    %c3 = arith.constant 3 : index
    %c0_12 = arith.constant 0 : index
    %c0_13 = arith.constant 0 : index
    %94 = vector.load %arg3[%c3, %c0_12, %c0_13] : memref<5x32x128xi8, #tpu.memory_space<vmem>>, vector<1x32x128xi8>
    %95 = vector.shape_cast %94 : vector<1x32x128xi8> to vector<32x128xi8>
    %96 = vector.shape_cast %93 : vector<32x128xi8> to vector<1x32x128xi8>
    tpu.vector_store %arg3[%c3, %c0_12, %c0_13], %96 {strides = array<i32>} : memref<5x32x128xi8, #tpu.memory_space<vmem>>, vector<1x32x128xi8>,
    %97 = arith.ori %73, %92 : vector<32x128xi1>
    %c0_14 = arith.constant 0 : index
    %c0_15 = arith.constant 0 : index
    %98 = vector.load %arg2[%c0_14, %c0_15] : memref<32x4xi32, #tpu.memory_space<vmem>>, vector<32x4xi32>
    %99 = vector.extract_strided_slice %98 {offsets = [0, 0], sizes = [32, 1], strides = [1, 1]} : vector<32x4xi32> to vector<32x1xi32>
    %100 = vector.broadcast %0 : vector<1x128xi32> to vector<32x128xi32>
    %101 = vector.broadcast %99 : vector<32x1xi32> to vector<32x128xi32>
    %102 = arith.cmpi sge, %100, %101 : vector<32x128xi32>
    %103 = vector.extract_strided_slice %98 {offsets = [0, 1], sizes = [32, 1], strides = [1, 1]} : vector<32x4xi32> to vector<32x1xi32>
    %104 = vector.broadcast %0 : vector<1x128xi32> to vector<32x128xi32>
    %105 = vector.broadcast %103 : vector<32x1xi32> to vector<32x128xi32>
    %106 = arith.cmpi slt, %104, %105 : vector<32x128xi32>
    %107 = arith.andi %102, %106 : vector<32x128xi1>
    %108 = vector.extract_strided_slice %98 {offsets = [0, 2], sizes = [32, 1], strides = [1, 1]} : vector<32x4xi32> to vector<32x1xi32>
    %109 = vector.broadcast %1 : vector<1x128xi32> to vector<32x128xi32>
    %110 = vector.broadcast %108 : vector<32x1xi32> to vector<32x128xi32>
    %111 = arith.cmpi sge, %109, %110 : vector<32x128xi32>
    %112 = arith.andi %107, %111 : vector<32x128xi1>
    %113 = vector.extract_strided_slice %98 {offsets = [0, 3], sizes = [32, 1], strides = [1, 1]} : vector<32x4xi32> to vector<32x1xi32>
    %114 = vector.broadcast %1 : vector<1x128xi32> to vector<32x128xi32>
    %115 = vector.broadcast %113 : vector<32x1xi32> to vector<32x128xi32>
    %116 = arith.cmpi slt, %114, %115 : vector<32x128xi32>
    %117 = arith.andi %112, %116 : vector<32x128xi1>
    %cst = arith.constant dense<true> : vector<32x128xi1>
    %118 = arith.xori %97, %cst : vector<32x128xi1>
    %119 = arith.andi %117, %118 : vector<32x128xi1>
    %120 = arith.extui %119 : vector<32x128xi1> to vector<32x128xi8>
    %c4 = arith.constant 4 : index
    %c0_16 = arith.constant 0 : index
    %c0_17 = arith.constant 0 : index
    %121 = vector.load %arg3[%c4, %c0_16, %c0_17] : memref<5x32x128xi8, #tpu.memory_space<vmem>>, vector<1x32x128xi8>
    %122 = vector.shape_cast %121 : vector<1x32x128xi8> to vector<32x128xi8>
    %123 = vector.shape_cast %120 : vector<32x128xi8> to vector<1x32x128xi8>
    tpu.vector_store %arg3[%c4, %c0_16, %c0_17], %123 {strides = array<i32>} : memref<5x32x128xi8, #tpu.memory_space<vmem>>, vector<1x32x128xi8>,
    return
  }
}

</mosaic_0001>

<bundles_post_ra>
// kernel: tpu_custom_call.1
= control target key start
LH: loop header
LB: loop body
LE: loop exit
PB: predicated region body
PF: predicated region fallthrough
CT: control target
= control target key end

     0   :  { %v562_v2 = vmov 4   ;;  %v563_v3 = vmov 0   ;;  %s1180_s0 = inlined_call_operand.vmem [shape: s32[2,128], index: 0, kind: input, shape index: {}]   ;;  %s1181_s1 = inlined_call_operand.vmem [shape: s32[32,16], index: 1, kind: input, shape index: {}]   ;;  %s1182_s2 = inlined_call_operand.vmem [shape: s32[32,4], index: 2, kind: input, shape index: {}]   ;;  %s1183_s3 = inlined_call_operand.hbm [shape: s8[5,32,128], index: 3, kind: output, shape index: {}]  }
   0x1   :  { %v605_v0 = vld [vmem:[%s1181_s1 + $0x10] sm:$0xff]  ;;  %v610_v1 = vld [vmem:[%s1181_s1 + $0x8] sm:$0xff]  ;;  %507 = vset.pattern.permute.xlu0 %v562_v2  ;;  %502 = vset.pattern.permute.xlu1 %v563_v3  ;;  %v618_v4 = vld [vmem:[%s1181_s1 + $0x18] sm:$0xff] }
   0x2   :  { %34 = vperm.xlu1 %502, %v605_v0   ;;  %116 = vperm.xlu0 %507, %v610_v1   ;;  %v623_v5 = vld [vmem:[%s1181_s1] sm:$0xff] }
   0x3   :  { %8 = vsyncpa [#allocation3], 0  ;;  %v564_v6 = vmov 5   ;;  %v565_v7 = vmov 1   ;;  %v566_v8 = vmov 6   ;;  %v567_v9 = vmov 2  }
   0x4   :  { %v568_v10 = vmov 7   ;;  %v569_v11 = vmov 8   ;;  %v570_v12 = vmov 3   ;;  %v571_v13 = vmov 9   ;;  %v674_v20 = vld [vmem:[%s1182_s2 + $0x8] sm:$0xff]  ;;  %v686_v21 = vld [vmem:[%s1182_s2] sm:$0xff] }
   0x5   :  { %v572_v14 = vmov 10   ;;  %v573_v15 = vmov 11   ;;  %v574_v16 = vmov 12   ;;  %v575_v17 = vmov 13   ;;  %v693_v22 = vld [vmem:[%s1182_s2 + $0x18] sm:$0xff]  ;;  %v372_v47 = vld [vmem:[%s1182_s2 + $0x10] sm:$0xff] }
   0x6   :  { %37 = vperm.xlu1 %502, %v618_v4   ;;  %508 = vset.pattern.permute.xlu0 %v564_v6  ;;  %v576_v18 = vmov 14   ;;  %v577_v19 = vmov 15   ;;  %v724_v29 = vld [vmem:[%s1180_s0] ss:$0 sm:$0xff]  ;;  %v740_v34 = vld [vmem:[%s1180_s0 + $0x1] ss:$0 sm:$0xff] }
   0x7   :  { %129 = vperm.xlu0 %508, %v623_v5   ;;  %v1197_v42 = vmov 0  ;;  %v1201_v61 = vmov 0  ;;  %s579_s2 = smov [#allocation2]  }
   0x8   :  { %s469_s30 = sshll.u32 %s579_s2, 4  ;;  %s470_s30 = int_to_ptr.vmem [resolvable:$true] %s469_s30 }
   0x9   :  { %s538_s4 = scalar_lea.vmem %s470_s30, 640  ;;  %p543_p1 = scmp.lt.s32.totalorder %s470_s30, %s470_s30 }
   0xa   :  { %503 = vset.pattern.permute.xlu1 %v565_v7  ;;  %p539_p0 = scmp.ne.s32.totalorder %s470_s30, %s538_s4  ;;  %p544_p2 = scmp.lt.s32.totalorder %s538_s4, %s538_s4 }
   0xb   :  { %47 = vperm.xlu1 %503, %v610_v1   ;;  %138 = vperm.xlu0 %508, %v618_v4  }
   0xc   :  { %p545_p3 = por %p544_p2, %p543_p1 }
   0xe   :  { %p546_p4 = pnand %p545_p3, %p539_p0 }
   0xf   :  { %50 = vperm.xlu1 %503, %v605_v0   ;;  %511 = vset.pattern.permute.xlu0 %v566_v8 }
  0x10   :  { %152 = vperm.xlu0 %511, %v610_v1  }
  0x13   :  { %504 = vset.pattern.permute.xlu1 %v567_v9 }
  0x14   :  { %512 = vset.pattern.permute.xlu0 %v568_v10  ;;  %68 = vperm.xlu1 %504, %v623_v5  }
  0x15   :  { %169 = vperm.xlu0 %512, %v623_v5  }
  0x18   :  { %74 = vperm.xlu1 %504, %v605_v0  }
  0x19   :  { %178 = vperm.xlu0 %512, %v618_v4  }
  0x1c   :  { %77 = vperm.xlu1 %504, %v618_v4  }
  0x1d   :  { %515 = vset.pattern.permute.xlu0 %v569_v11 }
  0x1e   :  { %202 = vperm.xlu0 %515, %v610_v1  }
  0x20   :  { %505 = vset.pattern.permute.xlu1 %v570_v12 }
  0x21   :  { %91 = vperm.xlu1 %505, %v610_v1  }
  0x22   :  { %516 = vset.pattern.permute.xlu0 %v571_v13 }
  0x23   :  { %215 = vperm.xlu0 %516, %v623_v5  }
  0x25   :  { %94 = vperm.xlu1 %505, %v605_v0  }
  0x27   :  { %224 = vperm.xlu0 %516, %v618_v4  }
  0x29   :  { %506 = vset.pattern.permute.xlu1 %v562_v2 }
  0x2a   :  { %113 = vperm.xlu1 %506, %v623_v5  }
  0x2b   :  { %519 = vset.pattern.permute.xlu0 %v572_v14 }
  0x2c   :  { %238 = vperm.xlu0 %519, %v610_v1  }
  0x2e   :  { %119 = vperm.xlu1 %506, %v605_v0  }
  0x30   :  { %520 = vset.pattern.permute.xlu0 %v573_v15 }
  0x31   :  { %255 = vperm.xlu0 %520, %v623_v5  }
  0x32   :  { %122 = vperm.xlu1 %506, %v618_v4  }
  0x35   :  { %264 = vperm.xlu0 %520, %v618_v4  }
  0x36   :  { %509 = vset.pattern.permute.xlu1 %v564_v6 }
  0x37   :  { %132 = vperm.xlu1 %509, %v610_v1  }
  0x39   :  { %523 = vset.pattern.permute.xlu0 %v574_v16 }
  0x3a   :  { %288 = vperm.xlu0 %523, %v610_v1  }
  0x3b   :  { %135 = vperm.xlu1 %509, %v605_v0  }
  0x3e   :  { %524 = vset.pattern.permute.xlu0 %v575_v17 }
  0x3f   :  { %301 = vperm.xlu0 %524, %v623_v5   ;;  %510 = vset.pattern.permute.xlu1 %v566_v8 }
  0x40   :  { %149 = vperm.xlu1 %510, %v623_v5  }
  0x43   :  { %310 = vperm.xlu0 %524, %v618_v4  }
  0x44   :  { %155 = vperm.xlu1 %510, %v605_v0  }
  0x47   :  { %527 = vset.pattern.permute.xlu0 %v576_v18 }
  0x48   :  { %324 = vperm.xlu0 %527, %v610_v1   ;;  %158 = vperm.xlu1 %510, %v618_v4  }
  0x4c   :  { %528 = vset.pattern.permute.xlu0 %v577_v19  ;;  %513 = vset.pattern.permute.xlu1 %v568_v10 }
  0x4d   :  { %341 = vperm.xlu0 %528, %v623_v5   ;;  %172 = vperm.xlu1 %513, %v610_v1  }
  0x51   :  { %350 = vperm.xlu0 %528, %v618_v4   ;;  %175 = vperm.xlu1 %513, %v605_v0  }
  0x55   :  { %530 = vset.pattern.permute.xlu0 %v563_v3  ;;  %514 = vset.pattern.permute.xlu1 %v569_v11 }
  0x56   :  { %28 = vperm.xlu0 %530, %v623_v5   ;;  %199 = vperm.xlu1 %514, %v623_v5  }
  0x5a   :  { %31 = vperm.xlu0 %530, %v610_v1   ;;  %205 = vperm.xlu1 %514, %v605_v0  }
  0x5e   :  { %378 = vperm.xlu0 %530, %v674_v20   ;;  %208 = vperm.xlu1 %514, %v618_v4  }
  0x62   :  { %532 = vset.pattern.permute.xlu0 %v565_v7  ;;  %517 = vset.pattern.permute.xlu1 %v571_v13 }
  0x63   :  { %44 = vperm.xlu0 %532, %v623_v5   ;;  %218 = vperm.xlu1 %517, %v610_v1  }
  0x67   :  { %53 = vperm.xlu0 %532, %v618_v4   ;;  %221 = vperm.xlu1 %517, %v605_v0  }
  0x6b   :  { %391 = vperm.xlu0 %532, %v686_v21   ;;  %518 = vset.pattern.permute.xlu1 %v572_v14 }
  0x6c   :  { %235 = vperm.xlu1 %518, %v623_v5  }
  0x6f   :  { %400 = vperm.xlu0 %532, %v693_v22  }
  0x70   :  { %241 = vperm.xlu1 %518, %v605_v0  }
  0x73   :  { %534 = vset.pattern.permute.xlu0 %v567_v9 }
  0x74   :  { %71 = vperm.xlu0 %534, %v610_v1   ;;  %244 = vperm.xlu1 %518, %v618_v4  }
  0x78   :  { %414 = vperm.xlu0 %534, %v674_v20   ;;  %521 = vset.pattern.permute.xlu1 %v573_v15 }
  0x79   :  { %258 = vperm.xlu1 %521, %v610_v1  }
  0x7c   :  { %536 = vset.pattern.permute.xlu0 %v570_v12 }
  0x7d   :  { %88 = vperm.xlu0 %536, %v623_v5   ;;  %261 = vperm.xlu1 %521, %v605_v0  }
  0x81   :  { %v35_v23 = vpop.permute.xlu1 %34  ;;  %97 = vperm.xlu0 %536, %v618_v4   ;;  %522 = vset.pattern.permute.xlu1 %v574_v16  ;;  %v706_v24 = vpop.permute.xlu0 %116 }
  0x82   :  { %285 = vperm.xlu1 %522, %v623_v5   ;;  %vm41_vm0 = vcmp.ge.s32.totalorder %v724_v29, %v35_v23  ;;  %vm125_vm9 = vcmp.ge.s32.totalorder %v724_v29, %v706_v24 }
  0x85   :  { %v709_v25 = vpop.permute.xlu1 %37  ;;  %431 = vperm.xlu0 %536, %v686_v21  }
  0x86   :  { %291 = vperm.xlu1 %522, %v605_v0   ;;  %v713_v26 = vpop.permute.xlu0 %129 }
  0x87   :  { %vm140_vm7 = vcmp.lt.s32.totalorder %v724_v29, %v713_v26 }
  0x89   :  { %440 = vperm.xlu0 %536, %v693_v22  }
  0x8a   :  { %v716_v27 = vpop.permute.xlu1 %47  ;;  %294 = vperm.xlu1 %522, %v618_v4   ;;  %v719_v28 = vpop.permute.xlu0 %138 }
  0x8b   :  { %vm143_vm11 = vcmp.lt.s32.totalorder %v724_v29, %v719_v28 }
  0x8e   :  { %v51_v30 = vpop.permute.xlu1 %50  ;;  %525 = vset.pattern.permute.xlu1 %v575_v17  ;;  %v1209_v17 = vmov 0 }
  0x8f   :  { %vm57_vm1 = vcmp.lt.s32.totalorder %v724_v29, %v51_v30  ;;  %304 = vperm.xlu1 %525, %v610_v1   ;;  %v730_v31 = vpop.permute.xlu0 %152 }
  0x90   :  { %vm61_vm2 = vmand %vm41_vm0, %vm57_vm1  ;;  %vm161_vm15 = vcmp.ge.s32.totalorder %v740_v34, %v730_v31 }
  0x93   :  { %307 = vperm.xlu1 %525, %v605_v0   ;;  %v733_v32 = vpop.permute.xlu1 %68 }
  0x94   :  { %v735_v33 = vpop.permute.xlu0 %169 }
  0x97   :  { %526 = vset.pattern.permute.xlu1 %v576_v18  ;;  %v75_v35 = vpop.permute.xlu1 %74 }
  0x98   :  { %vm81_vm3 = vcmp.ge.s32.totalorder %v740_v34, %v75_v35  ;;  %321 = vperm.xlu1 %526, %v623_v5   ;;  %v745_v36 = vpop.permute.xlu0 %178  ;;  %v1207_v5 = vmov 0  ;;  %v1227_v35 = vmov 0 }
  0x99   :  { %vm85_vm4 = vmand %vm61_vm2, %vm81_vm3  ;;  %vm180_vm3 = vcmp.lt.s32.totalorder %v740_v34, %v735_v33 }
  0x9b   :  { %v747_v37 = vpop.permute.xlu1 %77 }
  0x9c   :  { %327 = vperm.xlu1 %526, %v605_v0  }
  0x9d   :  { %v750_v38 = vpop.permute.xlu0 %202 }
  0xa0   :  { %330 = vperm.xlu1 %526, %v618_v4   ;;  %v753_v39 = vpop.permute.xlu1 %91 }
  0xa2   :  { %v755_v40 = vpop.permute.xlu0 %215 }
  0xa4   :  { %529 = vset.pattern.permute.xlu1 %v577_v19  ;;  %v95_v41 = vpop.permute.xlu1 %94  ;;  %v1211_v19 = vmov 0 }
  0xa5   :  { %vm101_vm5 = vcmp.lt.s32.totalorder %v740_v34, %v95_v41  ;;  %344 = vperm.xlu1 %529, %v610_v1   ;;  %v1205_v1 = vmov 0 }
  0xa6   :  { %vm760_vm6 = vmand %vm85_vm4, %vm101_vm5  ;;  %v764_v43 = vpop.permute.xlu0 %224 }
  0xa7   :  { %v1198_v42 = vsel %vm760_vm6, 4294967295, %v1197_v42  ;;  %vm79_vm6 = vcmp.ge.s32.totalorder %v740_v34, %v733_v32 }
  0xa9   :  { %347 = vperm.xlu1 %529, %v605_v0   ;;  %v114_v44 = vpop.permute.xlu1 %113 }
  0xaa   :  { %vm124_vm8 = vcmp.ge.s32.totalorder %v724_v29, %v114_v44  ;;  %v1237_v44 = vmov 0 }
  0xab   :  { %v767_v45 = vpop.permute.xlu0 %238  ;;  %vm144_vm13 = vmand %vm124_vm8, %vm140_vm7 }
  0xad   :  { %531 = vset.pattern.permute.xlu1 %v563_v3  ;;  %v120_v46 = vpop.permute.xlu1 %119 }
  0xae   :  { %375 = vperm.xlu1 %531, %v686_v21   ;;  %vm126_vm5 = vcmp.ge.s32.totalorder %v724_v29, %v120_v46 }
  0xb0   :  { %v774_v48 = vpop.permute.xlu0 %255 }
  0xb1   :  { %v123_v49 = vpop.permute.xlu1 %122 }
  0xb2   :  { %381 = vperm.xlu1 %531, %v372_v47   ;;  %vm127_vm12 = vcmp.ge.s32.totalorder %v724_v29, %v123_v49 }
  0xb3   :  { %vm803_vm1 = vmand %vm127_vm12, %vm143_vm11  ;;  %vm183_vm12 = vcmp.lt.s32.totalorder %v740_v34, %v745_v36 }
  0xb4   :  { %v776_v50 = vpop.permute.xlu0 %264 }
  0xb6   :  { %384 = vperm.xlu1 %531, %v693_v22   ;;  %v133_v51 = vpop.permute.xlu1 %132 }
  0xb7   :  { %vm141_vm10 = vcmp.lt.s32.totalorder %v724_v29, %v133_v51 }
  0xb8   :  { %vm145_vm0 = vmand %vm125_vm9, %vm141_vm10 }
  0xb9   :  { %v779_v52 = vpop.permute.xlu0 %288  ;;  %vm165_vm8 = vmand %vm145_vm0, %vm161_vm15 }
  0xba   :  { %533 = vset.pattern.permute.xlu1 %v565_v7  ;;  %v136_v53 = vpop.permute.xlu1 %135 }
  0xbb   :  { %394 = vperm.xlu1 %533, %v674_v20   ;;  %vm142_vm2 = vcmp.lt.s32.totalorder %v724_v29, %v136_v53 }
  0xbc   :  { %vm146_vm9 = vmand %vm126_vm5, %vm142_vm2 }
  0xbe   :  { %v783_v54 = vpop.permute.xlu0 %301 }
  0xbf   :  { %397 = vperm.xlu1 %533, %v372_v47   ;;  %v150_v55 = vpop.permute.xlu1 %149 }
  0xc0   :  { %vm160_vm14 = vcmp.ge.s32.totalorder %v740_v34, %v150_v55 }
  0xc1   :  { %vm164_vm4 = vmand %vm144_vm13, %vm160_vm14 }
  0xc2   :  { %v785_v56 = vpop.permute.xlu0 %310  ;;  %vm812_vm10 = vmand %vm164_vm4, %vm180_vm3 }
  0xc3   :  { %535 = vset.pattern.permute.xlu1 %v567_v9  ;;  %v156_v57 = vpop.permute.xlu1 %155  ;;  %v1202_v61 = vsel %vm812_vm10, 4294967295, %v1201_v61 }
  0xc4   :  { %411 = vperm.xlu1 %535, %v686_v21   ;;  %vm162_vm11 = vcmp.ge.s32.totalorder %v740_v34, %v156_v57  ;;  %v1213_v21 = vmov 0 }
  0xc5   :  { %vm166_vm0 = vmand %vm146_vm9, %vm162_vm11  ;;  %vm211_vm9 = vcmp.ge.s32.totalorder %v724_v29, %v750_v38  ;;  %vm247_vm11 = vcmp.ge.s32.totalorder %v740_v34, %v767_v45 }
  0xc7   :  { %v159_v58 = vpop.permute.xlu1 %158  ;;  %v801_v59 = vpop.permute.xlu0 %324 }
  0xc8   :  { %417 = vperm.xlu1 %535, %v372_v47   ;;  %vm163_vm7 = vcmp.ge.s32.totalorder %v740_v34, %v159_v58 }
  0xc9   :  { %vm167_vm13 = vmand %vm803_vm1, %vm163_vm7 }
  0xca   :  { %vm829_vm2 = vmand %vm167_vm13, %vm183_vm12 }
  0xcb   :  { %v1206_v1 = vsel %vm829_vm2, 4294967295, %v1205_v1 }
  0xcc   :  { %420 = vperm.xlu1 %535, %v693_v22   ;;  %v173_v62 = vpop.permute.xlu1 %172  ;;  %v818_v63 = vpop.permute.xlu0 %341 }
  0xcd   :  { %vm181_vm14 = vcmp.lt.s32.totalorder %v740_v34, %v173_v62 }
  0xce   :  { %vm825_vm15 = vmand %vm165_vm8, %vm181_vm14 }
  0xcf   :  { %vm188_vm1 = vmpackc.low %vm825_vm15, %vm812_vm10 }
  0xd0   :  { %537 = vset.pattern.permute.xlu1 %v570_v12  ;;  %v176_v2 = vpop.permute.xlu1 %175  ;;  %v834_v4 = vpop.permute.xlu0 %350 }
  0xd1   :  { %vm182_vm3 = vcmp.lt.s32.totalorder %v740_v34, %v176_v2  ;;  %434 = vperm.xlu1 %537, %v674_v20  }
  0xd2   :  { %vm842_vm4 = vmand %vm166_vm0, %vm182_vm3  ;;  %vm42_vm0 = vcmp.ge.s32.totalorder %v724_v29, %v709_v25 }
  0xd3   :  { %v1208_v5 = vsel %vm842_vm4, 4294967295, %v1207_v5  ;;  %vm189_vm5 = vmpackc.low %vm829_vm2, %vm842_vm4 }
  0xd4   :  { %vm190_vm7 = vmpackc.even %vm189_vm5, %vm188_vm1  ;;  %vm82_vm5 = vcmp.ge.s32.totalorder %v740_v34, %v747_v37 }
  0xd5   :  { %v191_v6 = vsel %vm190_vm7, 16843009, %v563_v3  ;;  %v29_v7 = vpop.permute.xlu0 %28  ;;  %437 = vperm.xlu1 %537, %v372_v47   ;;  %v200_v8 = vpop.permute.xlu1 %199  ;;  %vm226_vm7 = vcmp.lt.s32.totalorder %v724_v29, %v755_v40  ;;  %v1232_v40 = vmov 0 }
  0xd6   :  { %193 = vst [vmem:[#allocation2 + $0x8] sm:$0xff] %v191_v6  ;;  %v1259_v6 = vmov 0 }
  0xd9   :  { %v32_v9 = vpop.permute.xlu0 %31  ;;  %v206_v10 = vpop.permute.xlu1 %205 }
  0xda   :  { %vm40_vm8 = vcmp.ge.s32.totalorder %v724_v29, %v32_v9  ;;  %v1264_v9 = vmov 0 }
  0xdd   :  { %v209_v11 = vpop.permute.xlu1 %208  ;;  %v855_v12 = vpop.permute.xlu0 %378 }
  0xe2   :  { %v45_v13 = vpop.permute.xlu0 %44  ;;  %v219_v14 = vpop.permute.xlu1 %218 }
  0xe3   :  { %vm227_vm12 = vcmp.lt.s32.totalorder %v724_v29, %v219_v14 }
  0xe4   :  { %vm231_vm13 = vmand %vm211_vm9, %vm227_vm12  ;;  %vm210_vm9 = vcmp.ge.s32.totalorder %v724_v29, %v200_v8  ;;  %vm266_vm12 = vcmp.lt.s32.totalorder %v740_v34, %v774_v48 }
  0xe5   :  { %vm862_vm14 = vmand %vm231_vm13, %vm247_vm11 }
  0xe6   :  { %v54_v15 = vpop.permute.xlu0 %53  ;;  %v222_v16 = vpop.permute.xlu1 %221  ;;  %v1210_v17 = vsel %vm862_vm14, 4294967295, %v1209_v17  ;;  %vm230_vm13 = vmand %vm210_vm9, %vm226_vm7  ;;  %vm229_vm7 = vcmp.lt.s32.totalorder %v724_v29, %v764_v43  ;;  %vm213_vm9 = vcmp.ge.s32.totalorder %v724_v29, %v209_v11 }
  0xe7   :  { %vm58_vm1 = vcmp.lt.s32.totalorder %v724_v29, %v54_v15  ;;  %vm233_vm4 = vmand %vm213_vm9, %vm229_vm7 }
  0xe8   :  { %vm62_vm3 = vmand %vm42_vm0, %vm58_vm1 }
  0xe9   :  { %vm876_vm11 = vmand %vm62_vm3, %vm82_vm5  ;;  %vm39_vm3 = vcmp.ge.s32.totalorder %v724_v29, %v29_v7  ;;  %vm55_vm5 = vcmp.lt.s32.totalorder %v724_v29, %v45_v13  ;;  %v1272_v13 = vmov 0 }
  0xea   :  { %v874_v18 = vpop.permute.xlu0 %391  ;;  %v1212_v19 = vsel %vm876_vm11, 4294967295, %v1211_v19  ;;  %vm56_vm11 = vcmp.lt.s32.totalorder %v724_v29, %v716_v27 }
  0xeb   :  { %v236_v20 = vpop.permute.xlu1 %235 }
  0xec   :  { %vm246_vm0 = vcmp.ge.s32.totalorder %v740_v34, %v236_v20 }
  0xed   :  { %vm250_vm1 = vmand %vm230_vm13, %vm246_vm0 }
  0xee   :  { %vm884_vm2 = vmand %vm250_vm1, %vm266_vm12  ;;  %v888_v22 = vpop.permute.xlu0 %400  ;;  %vm228_vm12 = vcmp.lt.s32.totalorder %v724_v29, %v222_v16  ;;  %vm212_vm1 = vcmp.ge.s32.totalorder %v724_v29, %v206_v10 }
  0xef   :  { %v1214_v21 = vsel %vm884_vm2, 4294967295, %v1213_v21  ;;  %v242_v23 = vpop.permute.xlu1 %241  ;;  %vm60_vm13 = vmand %vm40_vm8, %vm56_vm11  ;;  %vm100_vm8 = vcmp.lt.s32.totalorder %v740_v34, %v753_v39  ;;  %vm269_vm11 = vcmp.lt.s32.totalorder %v740_v34, %v776_v50 }
  0xf0   :  { %vm59_vm0 = vmand %vm39_vm3, %vm55_vm5 }
  0xf1   :  { %vm901_vm10 = vmand %vm212_vm1, %vm228_vm12 }
  0xf2   :  { %vm911_vm5 = vmand %vm59_vm0, %vm79_vm6  ;;  %vm1223_vm0 = vnez %v1210_v17 }
  0xf3   :  { %v72_v24 = vpop.permute.xlu0 %71  ;;  %v245_v25 = vpop.permute.xlu1 %244 }
  0xf4   :  { %vm80_vm2 = vcmp.ge.s32.totalorder %v740_v34, %v72_v24  ;;  %vm249_vm14 = vcmp.ge.s32.totalorder %v740_v34, %v245_v25 }
  0xf5   :  { %vm84_vm3 = vmand %vm60_vm13, %vm80_vm2  ;;  %vm248_vm13 = vcmp.ge.s32.totalorder %v740_v34, %v242_v23 }
  0xf6   :  { %vm915_vm7 = vmand %vm84_vm3, %vm100_vm8 }
  0xf7   :  { %vm253_vm9 = vmand %vm233_vm4, %vm249_vm14  ;;  %v919_v30 = vpop.permute.xlu0 %414  ;;  %vm1226_vm4 = vnez %v1214_v21 }
  0xf8   :  { %vm921_vm12 = vmand %vm253_vm9, %vm269_vm11  ;;  %v259_v32 = vpop.permute.xlu1 %258  ;;  %vm1235_vm9 = vnez %v1208_v5 }
  0xf9   :  { %vm195_vm6 = vmor %vm915_vm7, %vm825_vm15  ;;  %vm267_vm2 = vcmp.lt.s32.totalorder %v740_v34, %v259_v32 }
  0xfa   :  { %vm933_vm1 = vmand %vm1223_vm0, %vm267_vm2  ;;  %vm1231_vm2 = vnez %v1202_v61 }
  0xfb   :  { %vm274_vm14 = vmpackc.low %vm933_vm1, %vm1226_vm4 }
  0xfc   :  { %vm943_vm8 = vmor %vm195_vm6, %vm933_vm1  ;;  %v89_v36 = vpop.permute.xlu0 %88  ;;  %v262_v37 = vpop.permute.xlu1 %261 }
  0xfd   :  { %v1228_v35 = vsel %vm943_vm8, 4294967295, %v1227_v35  ;;  %vm252_vm15 = vmand %vm901_vm10, %vm248_vm13  ;;  %vm99_vm11 = vcmp.lt.s32.totalorder %v740_v34, %v89_v36  ;;  %vm268_vm6 = vcmp.lt.s32.totalorder %v740_v34, %v262_v37 }
  0xfe   :  { %vm952_vm3 = vmand %vm911_vm5, %vm99_vm11 }
  0xff   :  { %vm194_vm10 = vmor %vm952_vm3, %vm1231_vm2 }
 0x100   :  { %v98_v39 = vpop.permute.xlu0 %97  ;;  %vm967_vm13 = vmor %vm194_vm10, %vm1226_vm4  ;;  %vm1234_vm10 = vnez %v1198_v42 }
 0x101   :  { %v1233_v40 = vsel %vm967_vm13, 4294967295, %v1232_v40  ;;  %v286_v41 = vpop.permute.xlu1 %285  ;;  %vm272_vm5 = vmand %vm252_vm15, %vm268_vm6  ;;  %vm102_vm11 = vcmp.lt.s32.totalorder %v740_v34, %v98_v39  ;;  %vm1239_vm15 = vnez %v1212_v19 }
 0x102   :  { %vm275_vm0 = vmpackc.low %vm921_vm12, %vm272_vm5 }
 0x103   :  { %vm276_vm2 = vmpackc.even %vm275_vm0, %vm274_vm14  ;;  %vm333_vm0 = vcmp.ge.s32.totalorder %v740_v34, %v801_v59  ;;  %v1254_v59 = vmov 0 }
 0x104   :  { %v277_v43 = vsel %vm276_vm2, 16843009, %v563_v3  ;;  %vm1236_vm8 = vmor %vm1234_vm10, %vm1235_vm9 }
 0x105   :  { %vm985_vm13 = vmor %vm1236_vm8, %vm272_vm5  ;;  %v292_v45 = vpop.permute.xlu1 %291  ;;  %279 = vst [vmem:[#allocation2 + $0x10] sm:$0xff] %v277_v43  ;;  %vm1241_vm8 = vnez %v1206_v1  ;;  %v1256_v1 = vmov 0 }
 0x106   :  { %v1238_v44 = vsel %vm985_vm13, 4294967295, %v1237_v44  ;;  %vm106_vm6 = vmand %vm1239_vm15, %vm102_vm11  ;;  %vm352_vm15 = vcmp.lt.s32.totalorder %v740_v34, %v818_v63  ;;  %vm578_vm13 = vmmov 1  }
 0x107   :  { %vm108_vm1 = vmpackc.low %vm106_vm6, %vm1234_vm10  ;;  %vm296_vm10 = vcmp.ge.s32.totalorder %v724_v29, %v286_v41 }
 0x108   :  { %vm1240_vm4 = vmpackc.low %vm915_vm7, %vm952_vm3  ;;  %vm297_vm7 = vcmp.ge.s32.totalorder %v724_v29, %v779_v52 }
 0x109   :  { %vm109_vm14 = vmpackc.even %vm108_vm1, %vm1240_vm4  ;;  %v295_v47 = vpop.permute.xlu1 %294 }
 0x10a   :  { %v110_v46 = vsel %vm109_vm14, 16843009, %v563_v3  ;;  %vm197_vm9 = vmor %vm106_vm6, %vm1241_vm8  ;;  %vm1248_vm8 = vnez %v1233_v40 }
 0x10b   :  { %111 = vst [vmem:[#allocation2] sm:$0xff] %v110_v46  ;;  %vm1003_vm5 = vmor %vm197_vm9, %vm921_vm12  ;;  %vm312_vm12 = vcmp.lt.s32.totalorder %v724_v29, %v783_v54 }
 0x10c   :  { %vm316_vm6 = vmand %vm296_vm10, %vm312_vm12  ;;  %vm355_vm12 = vcmp.lt.s32.totalorder %v740_v34, %v834_v4  ;;  %v432_v4 = vpop.permute.xlu0 %431 }
 0x10e   :  { %v305_v42 = vpop.permute.xlu1 %304 }
 0x10f   :  { %vm313_vm3 = vcmp.lt.s32.totalorder %v724_v29, %v305_v42 }
 0x110   :  { %vm317_vm11 = vmand %vm297_vm7, %vm313_vm3  ;;  %vm299_vm7 = vcmp.ge.s32.totalorder %v724_v29, %v295_v47  ;;  %v441_v10 = vpop.permute.xlu0 %440 }
 0x111   :  { %vm1012_vm2 = vmand %vm317_vm11, %vm333_vm0  ;;  %vm315_vm0 = vcmp.lt.s32.totalorder %v724_v29, %v785_v56 }
 0x112   :  { %v308_v50 = vpop.permute.xlu1 %307  ;;  %vm319_vm3 = vmand %vm299_vm7, %vm315_vm0 }
 0x117   :  { %v322_v51 = vpop.permute.xlu1 %321 }
 0x118   :  { %vm332_vm1 = vcmp.ge.s32.totalorder %v740_v34, %v322_v51 }
 0x119   :  { %vm336_vm4 = vmand %vm316_vm6, %vm332_vm1 }
 0x11a   :  { %vm1022_vm14 = vmand %vm336_vm4, %vm352_vm15  ;;  %vm314_vm15 = vcmp.lt.s32.totalorder %v724_v29, %v308_v50  ;;  %vm298_vm4 = vcmp.ge.s32.totalorder %v724_v29, %v292_v45 }
 0x11b   :  { %v328_v53 = vpop.permute.xlu1 %327  ;;  %vm318_vm0 = vmand %vm298_vm4, %vm314_vm15 }
 0x11c   :  { %vm334_vm9 = vcmp.ge.s32.totalorder %v740_v34, %v328_v53 }
 0x11d   :  { %vm338_vm15 = vmand %vm318_vm0, %vm334_vm9  ;;  %vm423_vm9 = vcmp.ge.s32.totalorder %v740_v34, %v919_v30  ;;  %vm387_vm0 = vcmp.ge.s32.totalorder %v724_v29, %v855_v12 }
 0x11f   :  { %v331_v54 = vpop.permute.xlu1 %330 }
 0x120   :  { %vm335_vm11 = vcmp.ge.s32.totalorder %v740_v34, %v331_v54 }
 0x121   :  { %vm339_vm10 = vmand %vm319_vm3, %vm335_vm11 }
 0x122   :  { %vm1037_vm6 = vmand %vm339_vm10, %vm355_vm12  ;;  %vm1253_vm12 = vnez %v1228_v35 }
 0x124   :  { %v345_v56 = vpop.permute.xlu1 %344 }
 0x125   :  { %vm353_vm7 = vcmp.lt.s32.totalorder %v740_v34, %v345_v56 }
 0x126   :  { %vm1050_vm3 = vmand %vm1012_vm2, %vm353_vm7 }
 0x127   :  { %vm360_vm11 = vmpackc.low %vm1050_vm3, %vm1022_vm14 }
 0x128   :  { %v348_v58 = vpop.permute.xlu1 %347 }
 0x129   :  { %vm354_vm4 = vcmp.lt.s32.totalorder %v740_v34, %v348_v58 }
 0x12a   :  { %vm1063_vm1 = vmand %vm338_vm15, %vm354_vm4 }
 0x12b   :  { %v1255_v59 = vsel %vm1063_vm1, 4294967295, %v1254_v59  ;;  %vm361_vm2 = vmpackc.low %vm1037_vm6, %vm1063_vm1 }
 0x12c   :  { %vm362_vm7 = vmpackc.even %vm361_vm2, %vm360_vm11  ;;  %vm402_vm11 = vcmp.lt.s32.totalorder %v724_v29, %v874_v18 }
 0x12d   :  { %v363_v60 = vsel %vm362_vm7, 16843009, %v563_v3  ;;  %v376_v61 = vpop.permute.xlu1 %375  ;;  %vm442_vm7 = vcmp.lt.s32.totalorder %v740_v34, %v432_v4 }
 0x12e   :  { %365 = vst [vmem:[#allocation2 + $0x18] sm:$0xff] %v363_v60  ;;  %vm386_vm2 = vcmp.ge.s32.totalorder %v724_v29, %v376_v61 }
 0x131   :  { %v382_v62 = vpop.permute.xlu1 %381 }
 0x135   :  { %v385_v63 = vpop.permute.xlu1 %384 }
 0x13a   :  { %v395_v0 = vpop.permute.xlu1 %394 }
 0x13b   :  { %vm403_vm15 = vcmp.lt.s32.totalorder %v724_v29, %v395_v0 }
 0x13c   :  { %vm407_vm4 = vmand %vm387_vm0, %vm403_vm15 }
 0x13d   :  { %vm1077_vm10 = vmand %vm407_vm4, %vm423_vm9 }
 0x13e   :  { %v1257_v1 = vsel %vm1077_vm10, 4294967295, %v1256_v1  ;;  %v398_v2 = vpop.permute.xlu1 %397  ;;  %vm1258_vm9 = vmor %vm1248_vm8, %vm1022_vm14  ;;  %vm389_vm14 = vcmp.ge.s32.totalorder %v724_v29, %v385_v63 }
 0x13f   :  { %vm1091_vm0 = vmxor %vm1258_vm9, %vm578_vm13  ;;  %vm405_vm9 = vcmp.lt.s32.totalorder %v724_v29, %v888_v22 }
 0x140   :  { %v1260_v6 = vsel %vm1091_vm0, 4294967295, %v1259_v6  ;;  %vm406_vm15 = vmand %vm386_vm2, %vm402_vm11 }
 0x141   :  { %vm1263_vm8 = vmor %vm1003_vm5, %vm1037_vm6  ;;  %vm1270_vm5 = vnez %v1255_v59  ;;  %vm1271_vm6 = vnez %v1238_v44 }
 0x142   :  { %vm1111_vm11 = vmxor %vm1263_vm8, %vm578_vm13 }
 0x143   :  { %v412_v5 = vpop.permute.xlu1 %411  ;;  %v1265_v9 = vsel %vm1111_vm11, 4294967295, %v1264_v9 }
 0x144   :  { %vm422_vm4 = vcmp.ge.s32.totalorder %v740_v34, %v412_v5 }
 0x145   :  { %vm426_vm10 = vmand %vm406_vm15, %vm422_vm4 }
 0x146   :  { %vm1096_vm1 = vmand %vm426_vm10, %vm442_vm7 }
 0x147   :  { %v418_v8 = vpop.permute.xlu1 %417  ;;  %vm1266_vm10 = vmmov %vm1050_vm3  ;;  %vm445_vm3 = vcmp.lt.s32.totalorder %v740_v34, %v441_v10 }
 0x148   :  { %vm1267_vm2 = vmor %vm1253_vm12, %vm1266_vm10  ;;  %vm404_vm12 = vcmp.lt.s32.totalorder %v724_v29, %v398_v2 }
 0x149   :  { %vm1121_vm7 = vmxor %vm1267_vm2, %vm578_vm13  ;;  %vm1277_vm2 = vnez %v1260_v6 }
 0x14a   :  { %vm368_vm15 = vmor %vm1271_vm6, %vm1270_vm5  ;;  %vm388_vm5 = vcmp.ge.s32.totalorder %v724_v29, %v382_v62 }
 0x14b   :  { %v421_v12 = vpop.permute.xlu1 %420  ;;  %vm409_vm4 = vmand %vm389_vm14, %vm405_vm9 }
 0x14c   :  { %vm425_vm8 = vcmp.ge.s32.totalorder %v740_v34, %v421_v12  ;;  %vm1144_vm14 = vmxor %vm368_vm15, %vm578_vm13 }
 0x14d   :  { %vm429_vm0 = vmand %vm409_vm4, %vm425_vm8 }
 0x14e   :  { %vm1134_vm10 = vmand %vm429_vm0, %vm445_vm3  ;;  %vm424_vm3 = vcmp.ge.s32.totalorder %v740_v34, %v418_v8  ;;  %vm1276_vm0 = vnez %v1257_v1 }
 0x14f   :  { %v1273_v13 = vsel %vm1134_vm10, 4294967295, %v1272_v13  ;;  %vm408_vm9 = vmand %vm388_vm5, %vm404_vm12 }
 0x150   :  { %v435_v14 = vpop.permute.xlu1 %434  ;;  %vm1278_vm11 = vmand %vm1096_vm1, %vm1277_vm2 }
 0x151   :  { %vm443_vm6 = vcmp.lt.s32.totalorder %v740_v34, %v435_v14  ;;  %vm428_vm15 = vmand %vm408_vm9, %vm424_vm3 }
 0x152   :  { %vm447_vm4 = vmand %vm1276_vm0, %vm443_vm6  ;;  %vm1279_vm6 = vnez %v1273_v13 }
 0x153   :  { %vm455_vm8 = vmand %vm447_vm4, %vm1121_vm7  ;;  %vm1280_vm7 = vnez %v1265_v9 }
 0x154   :  { %vm458_vm13 = vmpackc.low %vm455_vm8, %vm1278_vm11  ;;  %v438_v29 = vpop.permute.xlu1 %437 }
 0x155   :  { %vm444_vm12 = vcmp.lt.s32.totalorder %v740_v34, %v438_v29  ;;  %vm1281_vm0 = vmand %vm1279_vm6, %vm1280_vm7 }
 0x156   :  { %vm448_vm5 = vmand %vm428_vm15, %vm444_vm12 }
 0x157   :  { %vm456_vm10 = vmand %vm448_vm5, %vm1144_vm14 }
 0x158   :  { %vm459_vm4 = vmpackc.low %vm1281_vm0, %vm456_vm10 }
 0x159   :  { %vm460_vm1 = vmpackc.even %vm459_vm4, %vm458_vm13 }
 0x15a   :  { %v461_v16 = vsel %vm460_vm1, 16843009, %v563_v3 }
 0x15b   :  { %463 = vst [vmem:[#allocation2 + $0x20] sm:$0xff] %v461_v16 }
 0x15c   :  { %549 = shalt.err (!%p546_p4)
}
 0x15d   :  { %s550_s7 = scalar_lea.hbm %s1183_s3, 640 }
 0x15e   :  { %p551_p5 = scmp.ne.s32.totalorder %s1183_s3, %s550_s7  ;;  %p554_p6 = scmp.lt.u32.totalorder %s550_s7, %s1183_s3 }
 0x160   :  { %p556_p7 = pnand %p554_p6, %p551_p5 }
 0x162   :  { %559 = shalt.err (!%p556_p7)
}
 0x163   :  { %s580_s12 = smov 128   ;;  %s581_s13 = smov 8  }
 0x164   :  { %475 = dma.vmem_to_hbm [thread:$0]  %s470_s30, 640, %s1183_s3, [#allocation3], %s580_s12, %s580_s12, %s581_s13  }
 0x165   :  { %560 = dma.done.wait [#allocation3], 640  }
 0x166   :  { %561 = vsyncadd [#allocation3], 4294966656 }
 0x167   :  { %479 = vsyncpa [#allocation3], 1 }

</bundles_post_ra>
